<compile_context>
chip_gen: v6e
topology: v6e:2x2x1
jax: 0.10.0
libtpu: 0.0.40
codegen_flags: <defaults>
</compile_context>

<pallas_src>
import functools

import jax
import jax.numpy as jnp
from jax.experimental import pallas as pl
from jax.experimental.pallas import tpu as pltpu


def _round_up(x, m):
    return ((x + m - 1) // m) * m


def _vmem_capacity_bytes():
    """Physical VMEM per TensorCore; conservative fallback if the query fails."""
    try:
        cap = int(pltpu.get_tpu_info().vmem_capacity_bytes)
        if cap > 0:
            return cap
    except Exception:
        pass
    return 64 * 1024 * 1024  # v7x-sized fallback (safe everywhere)


def _make_fused_kernel(num_layers, compute_dtype):
    """One (batch, N-tile) block; layer loop is unrolled at trace time."""

    def kernel(x_ref, *refs):
        # refs = (w_0, shift_0, ..., w_{L-1}, shift_{L-1}, o_ref)
        o_ref = refs[-1]
        h = x_ref[0].astype(compute_dtype)          # (C_in, TN) bf16 MXU operand
        for l in range(num_layers):
            w = refs[2 * l][...]                    # (Cout_pad, Cin_eff) bf16, BN scale folded in
            sh = refs[2 * l + 1][...]               # (Cout_pad, 1) f32, conv bias + BN shift folded in
            y = jnp.dot(w, h, preferred_element_type=jnp.float32)
            a = jnp.maximum(y + sh, 0.0)            # f32 epilogue: one add + one max per element
            if l + 1 < num_layers:
                h = a.astype(compute_dtype)
            else:
                o_ref[0] = a.astype(o_ref.dtype)    # store full padded block; slice once in XLA

    return kernel


def init_shared_mlp_params(key, input_channel, layer_units, *, nontrivial_bn=True):
    """Raw (PyTorch-like) parameters, one dict per layer."""
    params = []
    cin = input_channel
    for cout in layer_units:
        key, kw, kb, kg, kbe, km, kv = jax.random.split(key, 7)
        bound = 1.0 / float(cin) ** 0.5
        w = jax.random.uniform(kw, (cout, cin), jnp.float32, -bound, bound)
        b = jax.random.uniform(kb, (cout,), jnp.float32, -bound, bound)
        if nontrivial_bn:
            gamma = jax.random.uniform(kg, (cout,), jnp.float32, 0.5, 1.5)
            beta = 0.1 * jax.random.normal(kbe, (cout,), jnp.float32)
            mean = 0.1 * jax.random.normal(km, (cout,), jnp.float32)
            var = jax.random.uniform(kv, (cout,), jnp.float32, 0.5, 1.5)
        else:
            gamma = jnp.ones((cout,), jnp.float32)
            beta = jnp.zeros((cout,), jnp.float32)
            mean = jnp.zeros((cout,), jnp.float32)
            var = jnp.ones((cout,), jnp.float32)
        params.append(dict(w=w, b=b, gamma=gamma, beta=beta, mean=mean, var=var))
        cin = cout
    return params


def pack_shared_mlp_params(raw_params, input_channel, *, eps=1e-5, weight_dtype=jnp.bfloat16):
    """Fold conv bias + eval-mode BN into (W', shift); pad cout to x8; W' in bf16.

    W' = scale[:, None] * W,  shift = beta + (b - mean) * scale.
    Padded output channels get zero weights/shift so they stay exactly zero through ReLU
    and contribute nothing to the next layer (whose padded input columns are also zero).
    """
    packed = []
    cin_eff = input_channel  # layer-0 contracting dim stays unpadded (matches x)
    for p in raw_params:
        w, b = p["w"], p["b"]
        cout, cin_real = w.shape
        cout_pad = _round_up(cout, 8)
        scale = p["gamma"] / jnp.sqrt(p["var"] + eps)
        shift = p["beta"] + (b - p["mean"]) * scale
        w_folded = w * scale[:, None]
        w_pad = jnp.zeros((cout_pad, cin_eff), jnp.float32).at[:cout, :cin_real].set(w_folded)
        sh = jnp.zeros((cout_pad, 1), jnp.float32).at[:cout, 0].set(shift)
        packed.append((w_pad.astype(weight_dtype), sh))
        cin_eff = cout_pad
    c_out_last = raw_params[-1]["w"].shape[0]
    return packed, c_out_last


def _choose_tile_and_vmem(B, C_in, N, packed_params, out_itemsize, x_itemsize,
                          single_buffer_params):
    """Pick the largest 128-multiple N tile that fits the per-chip VMEM budget."""
    cap = _vmem_capacity_bytes()
    budget = min(cap * 3 // 4, 100 * 1024 * 1024)   # ~48 MiB on v7x, ~96 MiB on v5e/v6e

    w_copies = 1 if single_buffer_params else 2
    weight_bytes = sum(w.size * w.dtype.itemsize + s.size * s.dtype.itemsize
                       for (w, s) in packed_params) * w_copies
    widest = max(w.shape[0] + w.shape[1] for (w, _) in packed_params)
    c_out_pad_last = packed_params[-1][0].shape[0]

    def need(tn):
        x_tile = 2 * C_in * tn * x_itemsize               # double-buffered input tile
        o_tile = 2 * c_out_pad_last * tn * out_itemsize   # double-buffered output tile
        inter = widest * tn * 4                           # worst-case live f32 intermediates
        return x_tile + o_tile + inter + weight_bytes

    n_ceil = _round_up(N, 128)
    tn = 128
    for cand in (2048, 1024, 512, 256, 128):
        if cand <= n_ceil and need(cand) <= budget:
            tn = cand
            break
    # v7x has 2 TensorCores: keep >= ~2 grid steps per core so "parallel" actually helps.
    while tn > 128 and B * pl.cdiv(N, tn) < 4:
        tn //= 2

    vmem_limit = max(budget, need(tn) + (2 << 20))
    vmem_limit = min(vmem_limit, max(cap * 9 // 10, budget))
    return tn, int(vmem_limit)


def shared_mlp_forward(x, packed_params, *, c_out_last, out_dtype=None, tn=None,
                       single_buffer_params=True):
    """x: (B, C_in, N) (PyTorch NCW). Returns (B, c_out_last, N) in `out_dtype`."""
    B, C_in, N = x.shape
    num_layers = len(packed_params)
    out_dtype = x.dtype if out_dtype is None else jnp.dtype(out_dtype)
    c_out_pad_last = packed_params[-1][0].shape[0]

    if tn is None:
        tn, vmem_limit = _choose_tile_and_vmem(
            B, C_in, N, packed_params, jnp.dtype(out_dtype).itemsize,
            x.dtype.itemsize, single_buffer_params)
    else:
        tn = _round_up(tn, 128)
        vmem_limit = int(min(_vmem_capacity_bytes() * 3 // 4, 100 * 1024 * 1024))

    # Pad N so every tile is a full, lane-dense (unmasked) block. Padded columns never
    # mix with real ones (k=1 conv) and are sliced away below.
    n_pad = _round_up(N, tn)
    if n_pad != N:
        x = jnp.pad(x, ((0, 0), (0, 0), (0, n_pad - N)))

    grid = (B, n_pad // tn)

    flat_params = []
    in_specs = [pl.BlockSpec((1, C_in, tn), lambda b, j: (b, 0, j))]
    param_spec_kwargs = (dict(pipeline_mode=pl.Buffered(1))
                         if single_buffer_params else {})
    for (w, sh) in packed_params:
        flat_params += [w, sh]
        # Tiny, grid-invariant params: resident whole-array VMEM blocks; single-buffered
        # since they are never re-fetched across grid steps.
        in_specs.append(pl.BlockSpec(w.shape, lambda b, j: (0, 0), **param_spec_kwargs))
        in_specs.append(pl.BlockSpec(sh.shape, lambda b, j: (0, 0), **param_spec_kwargs))

    out_spec = pl.BlockSpec((1, c_out_pad_last, tn), lambda b, j: (b, 0, j))

    kernel = _make_fused_kernel(num_layers, jnp.bfloat16)
    out_pad = pl.pallas_call(
        kernel,
        out_shape=jax.ShapeDtypeStruct((B, c_out_pad_last, n_pad), out_dtype),
        grid=grid,
        in_specs=in_specs,
        out_specs=out_spec,
        compiler_params=pltpu.CompilerParams(
            dimension_semantics=("parallel", "parallel"),
            vmem_limit_bytes=vmem_limit,
        ),
    )(x, *flat_params)

    # Single cheap XLA slice instead of an unaligned slice + masked stores per grid step.
    return out_pad[:, :c_out_last, :N]


def _reference_forward(x, raw_params, eps=1e-5):
    """Pure-JAX reference (Conv1d k=1 -> eval-mode BN -> ReLU per layer), full f32."""
    h = x
    for p in raw_params:
        y = jnp.einsum("oc,bcn->bon", p["w"], h, precision="highest")
        y = y + p["b"][None, :, None]
        scale = p["gamma"] / jnp.sqrt(p["var"] + eps)
        y = (y - p["mean"][None, :, None]) * scale[None, :, None] + p["beta"][None, :, None]
        h = jnp.maximum(y, 0.0)
    return h


if __name__ == "__main__":
    key = jax.random.PRNGKey(0)
    k_x, k_p = jax.random.split(key)

    B, C_in, N = 2, 4, 16
    layer_units = [8, 16]

    x = jax.random.normal(k_x, (B, C_in, N), jnp.float32)
    raw_params = init_shared_mlp_params(k_p, C_in, layer_units)
    packed_params, c_out_last = pack_shared_mlp_params(raw_params, C_in)

    fwd = jax.jit(functools.partial(shared_mlp_forward, c_out_last=c_out_last))
    try:
        out = jax.block_until_ready(fwd(x, packed_params))
    except Exception:
        # Fallback if this Pallas build rejects single-buffered (pl.Buffered(1)) params.
        fwd = jax.jit(functools.partial(shared_mlp_forward, c_out_last=c_out_last,
                                        single_buffer_params=False))
        out = jax.block_until_ready(fwd(x, packed_params))

    ref = _reference_forward(x, raw_params)
    assert out.shape == (B, layer_units[-1], N), out.shape
    max_err = float(jnp.max(jnp.abs(out - ref)))
    # bf16 MXU operands with f32 accumulation: loose-but-meaningful tolerance vs f32 reference.
    assert jnp.allclose(out, ref, atol=5e-2, rtol=5e-2), f"mismatch vs reference: {max_err}"

    print("KERNEL_OK")
</pallas_src>

<mosaic_0001>
module attributes {stable_mosaic.version = 11 : i64} {
  func.func @kernel(%arg0: i32, %arg1: i32, %arg2: memref<1x4x128xf32, #tpu.memory_space<vmem>>, %arg3: memref<8x4xbf16, #tpu.memory_space<vmem>>, %arg4: memref<8x1xf32, #tpu.memory_space<vmem>>, %arg5: memref<16x8xbf16, #tpu.memory_space<vmem>>, %arg6: memref<16x1xf32, #tpu.memory_space<vmem>>, %arg7: memref<1x16x128xf32, #tpu.memory_space<vmem>>) attributes {dimension_semantics = [#tpu.dimension_semantics<parallel>, #tpu.dimension_semantics<parallel>], iteration_bounds = array<i64: 2, 1>, scalar_prefetch = 0 : i64, scratch_operands = 0 : i64, tpu.core_type = #tpu.core_type<tc>, window_params = [{transform_indices = @transform_0, window_bounds = array<i64: 1, 4, 128>}, {pipeline_mode = #tpu.pipeline_mode<synchronous>, transform_indices = @transform_1, window_bounds = array<i64: 8, 4>}, {pipeline_mode = #tpu.pipeline_mode<synchronous>, transform_indices = @transform_2, window_bounds = array<i64: 8, 1>}, {pipeline_mode = #tpu.pipeline_mode<synchronous>, transform_indices = @transform_3, window_bounds = array<i64: 16, 8>}, {pipeline_mode = #tpu.pipeline_mode<synchronous>, transform_indices = @transform_4, window_bounds = array<i64: 16, 1>}, {transform_indices = @transform_5, window_bounds = array<i64: 1, 16, 128>}]} {
    %c0 = arith.constant 0 : index
    %c0_0 = arith.constant 0 : index
    %c0_1 = arith.constant 0 : index
    %0 = vector.load %arg2[%c0, %c0_0, %c0_1] : memref<1x4x128xf32, #tpu.memory_space<vmem>>, vector<1x4x128xf32>
    %1 = vector.shape_cast %0 : vector<1x4x128xf32> to vector<4x128xf32>
    %2 = arith.truncf %1 : vector<4x128xf32> to vector<4x128xbf16>
    %c0_2 = arith.constant 0 : index
    %c0_3 = arith.constant 0 : index
    %3 = vector.load %arg3[%c0_2, %c0_3] : memref<8x4xbf16, #tpu.memory_space<vmem>>, vector<8x4xbf16>
    %c0_4 = arith.constant 0 : index
    %c0_5 = arith.constant 0 : index
    %4 = vector.load %arg4[%c0_4, %c0_5] : memref<8x1xf32, #tpu.memory_space<vmem>>, vector<8x1xf32>
    %cst = arith.constant dense<0.000000e+00> : vector<8x128xf32>
    %5 = tpu.matmul %3, %2, %cst {dimension_numbers = #tpu.dot_dimension_numbers<[1], [0], [0], [1], [0, 0, 1, 1], [], []>} : vector<8x4xbf16>, vector<4x128xbf16>, vector<8x128xf32> -> vector<8x128xf32>
    %6 = vector.broadcast %4 : vector<8x1xf32> to vector<8x128xf32>
    %7 = arith.addf %5, %6 : vector<8x128xf32>
    %cst_6 = arith.constant 0.000000e+00 : f32
    %8 = vector.broadcast %cst_6 : f32 to vector<8x128xf32>
    %9 = arith.maximumf %7, %8 : vector<8x128xf32>
    %10 = arith.truncf %9 : vector<8x128xf32> to vector<8x128xbf16>
    %c0_7 = arith.constant 0 : index
    %c0_8 = arith.constant 0 : index
    %11 = vector.load %arg5[%c0_7, %c0_8] : memref<16x8xbf16, #tpu.memory_space<vmem>>, vector<16x8xbf16>
    %c0_9 = arith.constant 0 : index
    %c0_10 = arith.constant 0 : index
    %12 = vector.load %arg6[%c0_9, %c0_10] : memref<16x1xf32, #tpu.memory_space<vmem>>, vector<16x1xf32>
    %cst_11 = arith.constant dense<0.000000e+00> : vector<16x128xf32>
    %13 = tpu.matmul %11, %10, %cst_11 {dimension_numbers = #tpu.dot_dimension_numbers<[1], [0], [0], [1], [0, 0, 1, 1], [], []>} : vector<16x8xbf16>, vector<8x128xbf16>, vector<16x128xf32> -> vector<16x128xf32>
    %14 = vector.broadcast %12 : vector<16x1xf32> to vector<16x128xf32>
    %15 = arith.addf %13, %14 : vector<16x128xf32>
    %cst_12 = arith.constant 0.000000e+00 : f32
    %16 = vector.broadcast %cst_12 : f32 to vector<16x128xf32>
    %17 = arith.maximumf %15, %16 : vector<16x128xf32>
    %c0_13 = arith.constant 0 : index
    %c0_14 = arith.constant 0 : index
    %c0_15 = arith.constant 0 : index
    %18 = vector.load %arg7[%c0_13, %c0_14, %c0_15] : memref<1x16x128xf32, #tpu.memory_space<vmem>>, vector<1x16x128xf32>
    %19 = vector.shape_cast %18 : vector<1x16x128xf32> to vector<16x128xf32>
    %20 = vector.shape_cast %17 : vector<16x128xf32> to vector<1x16x128xf32>
    tpu.vector_store %arg7[%c0_13, %c0_14, %c0_15], %20 {strides = array<i32>} : memref<1x16x128xf32, #tpu.memory_space<vmem>>, vector<1x16x128xf32>,
    return
  }
  func.func @transform_0(%arg0: i32, %arg1: i32) -> (i32, i32, i32) {
    %c0_i32 = arith.constant 0 : i32
    %c0_i32_0 = arith.constant 0 : i32
    return %arg0, %c0_i32, %arg1 : i32, i32, i32
  }
  func.func @transform_1(%arg0: i32, %arg1: i32) -> (i32, i32) {
    %c0_i32 = arith.constant 0 : i32
    %c0_i32_0 = arith.constant 0 : i32
    %c0_i32_1 = arith.constant 0 : i32
    return %c0_i32, %c0_i32_0 : i32, i32
  }
  func.func @transform_2(%arg0: i32, %arg1: i32) -> (i32, i32) {
    %c0_i32 = arith.constant 0 : i32
    %c0_i32_0 = arith.constant 0 : i32
    %c0_i32_1 = arith.constant 0 : i32
    return %c0_i32, %c0_i32_0 : i32, i32
  }
  func.func @transform_3(%arg0: i32, %arg1: i32) -> (i32, i32) {
    %c0_i32 = arith.constant 0 : i32
    %c0_i32_0 = arith.constant 0 : i32
    %c0_i32_1 = arith.constant 0 : i32
    return %c0_i32, %c0_i32_0 : i32, i32
  }
  func.func @transform_4(%arg0: i32, %arg1: i32) -> (i32, i32) {
    %c0_i32 = arith.constant 0 : i32
    %c0_i32_0 = arith.constant 0 : i32
    %c0_i32_1 = arith.constant 0 : i32
    return %c0_i32, %c0_i32_0 : i32, i32
  }
  func.func @transform_5(%arg0: i32, %arg1: i32) -> (i32, i32, i32) {
    %c0_i32 = arith.constant 0 : i32
    %c0_i32_0 = arith.constant 0 : i32
    return %arg0, %c0_i32, %arg1 : i32, i32, i32
  }
}

module attributes {stable_mosaic.version = 11 : i64} {
  func.func @kernel(%arg0: i32, %arg1: i32, %arg2: memref<1x4x128xf32, #tpu.memory_space<vmem>>, %arg3: memref<8x4xbf16, #tpu.memory_space<vmem>>, %arg4: memref<8x1xf32, #tpu.memory_space<vmem>>, %arg5: memref<16x8xbf16, #tpu.memory_space<vmem>>, %arg6: memref<16x1xf32, #tpu.memory_space<vmem>>, %arg7: memref<1x16x128xf32, #tpu.memory_space<vmem>>) attributes {dimension_semantics = [#tpu.dimension_semantics<parallel>, #tpu.dimension_semantics<parallel>], iteration_bounds = array<i64: 2, 1>, scalar_prefetch = 0 : i64, scratch_operands = 0 : i64, tpu.core_type = #tpu.core_type<tc>, window_params = [{transform_indices = @transform_0, window_bounds = array<i64: 1, 4, 128>}, {pipeline_mode = #tpu.pipeline_mode<synchronous>, transform_indices = @transform_1, window_bounds = array<i64: 8, 4>}, {pipeline_mode = #tpu.pipeline_mode<synchronous>, transform_indices = @transform_2, window_bounds = array<i64: 8, 1>}, {pipeline_mode = #tpu.pipeline_mode<synchronous>, transform_indices = @transform_3, window_bounds = array<i64: 16, 8>}, {pipeline_mode = #tpu.pipeline_mode<synchronous>, transform_indices = @transform_4, window_bounds = array<i64: 16, 1>}, {transform_indices = @transform_5, window_bounds = array<i64: 1, 16, 128>}]} {
    %c0 = arith.constant 0 : index
    %c0_0 = arith.constant 0 : index
    %c0_1 = arith.constant 0 : index
    %0 = vector.load %arg2[%c0, %c0_0, %c0_1] : memref<1x4x128xf32, #tpu.memory_space<vmem>>, vector<1x4x128xf32>
    %1 = vector.shape_cast %0 : vector<1x4x128xf32> to vector<4x128xf32>
    %2 = arith.truncf %1 : vector<4x128xf32> to vector<4x128xbf16>
    %c0_2 = arith.constant 0 : index
    %c0_3 = arith.constant 0 : index
    %3 = vector.load %arg3[%c0_2, %c0_3] : memref<8x4xbf16, #tpu.memory_space<vmem>>, vector<8x4xbf16>
    %c0_4 = arith.constant 0 : index
    %c0_5 = arith.constant 0 : index
    %4 = vector.load %arg4[%c0_4, %c0_5] : memref<8x1xf32, #tpu.memory_space<vmem>>, vector<8x1xf32>
    %cst = arith.constant dense<0.000000e+00> : vector<8x128xf32>
    %5 = tpu.matmul %3, %2, %cst {dimension_numbers = #tpu.dot_dimension_numbers<[1], [0], [0], [1], [0, 0, 1, 1], [], []>} : vector<8x4xbf16>, vector<4x128xbf16>, vector<8x128xf32> -> vector<8x128xf32>
    %6 = vector.broadcast %4 : vector<8x1xf32> to vector<8x128xf32>
    %7 = arith.addf %5, %6 : vector<8x128xf32>
    %cst_6 = arith.constant 0.000000e+00 : f32
    %8 = vector.broadcast %cst_6 : f32 to vector<8x128xf32>
    %9 = arith.maximumf %7, %8 : vector<8x128xf32>
    %10 = arith.truncf %9 : vector<8x128xf32> to vector<8x128xbf16>
    %c0_7 = arith.constant 0 : index
    %c0_8 = arith.constant 0 : index
    %11 = vector.load %arg5[%c0_7, %c0_8] : memref<16x8xbf16, #tpu.memory_space<vmem>>, vector<16x8xbf16>
    %c0_9 = arith.constant 0 : index
    %c0_10 = arith.constant 0 : index
    %12 = vector.load %arg6[%c0_9, %c0_10] : memref<16x1xf32, #tpu.memory_space<vmem>>, vector<16x1xf32>
    %cst_11 = arith.constant dense<0.000000e+00> : vector<16x128xf32>
    %13 = tpu.matmul %11, %10, %cst_11 {dimension_numbers = #tpu.dot_dimension_numbers<[1], [0], [0], [1], [0, 0, 1, 1], [], []>} : vector<16x8xbf16>, vector<8x128xbf16>, vector<16x128xf32> -> vector<16x128xf32>
    %14 = vector.broadcast %12 : vector<16x1xf32> to vector<16x128xf32>
    %15 = arith.addf %13, %14 : vector<16x128xf32>
    %cst_12 = arith.constant 0.000000e+00 : f32
    %16 = vector.broadcast %cst_12 : f32 to vector<16x128xf32>
    %17 = arith.maximumf %15, %16 : vector<16x128xf32>
    %c0_13 = arith.constant 0 : index
    %c0_14 = arith.constant 0 : index
    %c0_15 = arith.constant 0 : index
    %18 = vector.load %arg7[%c0_13, %c0_14, %c0_15] : memref<1x16x128xf32, #tpu.memory_space<vmem>>, vector<1x16x128xf32>
    %19 = vector.shape_cast %18 : vector<1x16x128xf32> to vector<16x128xf32>
    %20 = vector.shape_cast %17 : vector<16x128xf32> to vector<1x16x128xf32>
    tpu.vector_store %arg7[%c0_13, %c0_14, %c0_15], %20 {strides = array<i32>} : memref<1x16x128xf32, #tpu.memory_space<vmem>>, vector<1x16x128xf32>,
    return
  }
  func.func @transform_0(%arg0: i32, %arg1: i32) -> (i32, i32, i32) {
    %c0_i32 = arith.constant 0 : i32
    %c0_i32_0 = arith.constant 0 : i32
    return %arg0, %c0_i32, %arg1 : i32, i32, i32
  }
  func.func @transform_1(%arg0: i32, %arg1: i32) -> (i32, i32) {
    %c0_i32 = arith.constant 0 : i32
    %c0_i32_0 = arith.constant 0 : i32
    %c0_i32_1 = arith.constant 0 : i32
    return %c0_i32, %c0_i32_0 : i32, i32
  }
  func.func @transform_2(%arg0: i32, %arg1: i32) -> (i32, i32) {
    %c0_i32 = arith.constant 0 : i32
    %c0_i32_0 = arith.constant 0 : i32
    %c0_i32_1 = arith.constant 0 : i32
    return %c0_i32, %c0_i32_0 : i32, i32
  }
  func.func @transform_3(%arg0: i32, %arg1: i32) -> (i32, i32) {
    %c0_i32 = arith.constant 0 : i32
    %c0_i32_0 = arith.constant 0 : i32
    %c0_i32_1 = arith.constant 0 : i32
    return %c0_i32, %c0_i32_0 : i32, i32
  }
  func.func @transform_4(%arg0: i32, %arg1: i32) -> (i32, i32) {
    %c0_i32 = arith.constant 0 : i32
    %c0_i32_0 = arith.constant 0 : i32
    %c0_i32_1 = arith.constant 0 : i32
    return %c0_i32, %c0_i32_0 : i32, i32
  }
  func.func @transform_5(%arg0: i32, %arg1: i32) -> (i32, i32, i32) {
    %c0_i32 = arith.constant 0 : i32
    %c0_i32_0 = arith.constant 0 : i32
    return %arg0, %c0_i32, %arg1 : i32, i32, i32
  }
}

</mosaic_0001>

<bundles_post_ra>
// kernel: shared_mlp_forward.1
= control target key start
LH: loop header
LB: loop body
LE: loop exit
PB: predicated region body
PF: predicated region fallthrough
CT: control target
= control target key end

     0   :  { %10 = vsyncpa [#allocation3], 0  ;;  %s805_s0 = inlined_call_operand.vmem [shape: f32[2,4,128], index: 0, kind: input, shape index: {}]   ;;  %s806_s1 = inlined_call_operand.vmem [shape: bf16[8,4], index: 1, kind: input, shape index: {}]   ;;  %s807_s2 = inlined_call_operand.vmem [shape: f32[8,1], index: 2, kind: input, shape index: {}]   ;;  %s808_s3 = inlined_call_operand.vmem [shape: bf16[16,8], index: 3, kind: input, shape index: {}]   ;;  %s809_s4 = inlined_call_operand.vmem [shape: f32[16,1], index: 4, kind: input, shape index: {}]   ;;  %s810_s5 = inlined_call_operand.hbm [shape: f32[2,16,128], index: 5, kind: output, shape index: {}]  }
   0x1   :  { %12 = vsyncpa [#allocation3 + $0x1], 0  ;;  %s676_s18 = smov 0   ;;  %s678_s19 = smov 0  }
   0x2   :  { %s680_s20 = smov 0   ;;  %s682_s21 = smov 0  }
   0x3   :  { %s684_s22 = smov 0   ;;  %s686_s23 = smov 0  }
   0x4 LB: > { %s467_s24 = sadd.s32 4294967295, %s638_s23   ;;  %s468_s25 = sadd.s32 4294967294, %s638_s23   ;;  %s638_s23 = sphi %s686_s23, %s18_s23   ;;  %s634_s22 = sphi %s684_s22, %s817_s22   ;;  %s630_s21 = sphi %s682_s21, %s816_s21   ;;  %s626_s20 = sphi %s680_s20, %s815_s20   ;;  %s622_s19 = sphi %s678_s19, %s814_s19   ;;  %s618_s18 = sphi %s676_s18, %s813_s18  }
   0x5   : > { %s30_s26 = sadd.s32 1, %s634_s22  ;;  %s151_s27 = sadd.s32 1, %s626_s20 }
   0x6   : > { %p32_p0 = scmp.ge.s32.totalorder %s30_s26, 2  ;;  %p161_p1 = scmp.ne.s32.totalorder %s626_s20, %s622_s19 }
   0x7   : > { %p162_p2 = scmp.eq.s32.totalorder %s467_s24, 1  ;;  %p167_p3 = scmp.ne.s32.totalorder %s622_s19, %s618_s18 }
   0x8   : > { %s819_s26 = smov (%p32_p0, %s30_s26), 0  ;;  %p168_p5 = scmp.eq.s32.totalorder %s468_s25, 1 }
   0x9   : > { %p716_p4 = por %p162_p2, %p161_p1  ;;  %s146_s29 = ssub.s32 %s634_s22, %s819_s26 }
   0xa   : > { %p471_p6 = scmp.ge.s32.totalorder %s638_s23, 1  ;;  %p149_p7 = scmp.eq.s32.totalorder %s146_s29, 0 }
   0xb   : > { %p723_p8 = por %p168_p5, %p167_p3  ;;  %p208_p9 = scmp.lt.s32.totalorder %s638_s23, 3 }
   0xc   : > { %s729_s6 = scalar_select %p149_p7, %s626_s20, %s151_s27  }
   0xd   : > { %p209_p10 = pnand %p471_p6, %p208_p9 }
   0xe   : > { %p238_p11 = scmp.lt.s32.totalorder (!%p209_p10), %s630_s21, 1  ;;  %s235_s7 = sand.u32 (!%p209_p10), 1, %s622_s19  }
   0xf   : > { %212 = sbr.rel (%p209_p10) target bundleno = 449 (0x1c1), region = 40  ;;  %s472_s8 = sshll.u32 (!%p209_p10), %s235_s7, 4 }
  0x10   : > { %s482_s11 = sshll.u32 (!%p209_p10), %s630_s21, 8 }
  0x11   : > { %s758_s14 = scalar_lea.hbm (!%p209_p10), %s810_s5, %s482_s11 }
  0x14   : > { %v640_v0 = vmov 0.0   ;;  %vm641_vm0 = vmmov 0   ;;  %v249_v1 = vld [vmem:[%s807_s2] sm:$0xff]  ;;  %s239_s9 = scalar_select %p238_p11, %s630_s21, 1  ;;  %v642_v2 = vmov 0   ;;  %vm259_vm1 = vcmask 1041408  }
  0x15   : > { %487 = vmatprep.subr.bf16.mxu0 %v640_v0  ;;  %489 = vmatprep.mubr.msk.bf16.mxu0 %vm641_vm0, %v640_v0  ;;  %v307_v3 = vld [vmem:[%s809_s4] sm:$0xff]  ;;  %vm255_vm2 = vcmask 31744   ;;  %v308_v8 = vld [vmem:[%s809_s4 + $0x8] sm:$0xff]  ;;  %vm328_vm3 = vcmask 1043456   ;;  %vm324_vm4 = vcmask 64512   ;;  %s643_s21 = smov [#allocation2]  }
  0x16   : > { %559 = vset.pattern.permute.xlu0 %v642_v2  ;;  %493 = vmatprep.subr.bf16.mxu1 %v640_v0  ;;  %s473_s10 = sshll.u32 %s239_s9, 2  ;;  %v248_v7 = vld [vmem:[%s806_s1] sm:$0xf]  ;;  %s237_s9 = scalar_lea.vmem [#allocation2], %s472_s8 }
  0x17   : > { %252 = vperm.xlu0 %559, %v249_v1   ;;  %495 = vmatprep.mubr.msk.bf16.mxu1 %vm641_vm0, %v640_v0  ;;  %s244_s15 = scalar_lea.vmem %s805_s0, %s473_s10  ;;  %v561_v18 = vld [vmem:[%s808_s3] sm:$0xff]   ;;  %s392_s10 = sshll.u32 %s237_s9, 4  ;;  %s753_s10 = int_to_ptr.vmem [resolvable:$true] %s392_s10 }
  0x18   : > { %560 = vset.pattern.permute.xlu1 %v642_v2  ;;  %v246_v4 = vld [vmem:[%s244_s15] sm:$0xf]  ;;  %s760_s15 = scalar_lea.sflag [#allocation3], %s235_s7  ;;  %s562_s16 = scalar_lea.vmem %s753_s10, 256 }
  0x19   : > { %v247_v5 = vpack.c.bf16 %v246_v4, %v246_v4  ;;  %316 = vperm.xlu1 %560, %v308_v8   ;;  %p563_p12 = scmp.ne.s32.totalorder %s753_s10, %s562_s16  ;;  %s566_s17 = sshll.u32 %s643_s21, 4  ;;  %s567_s17 = int_to_ptr.vmem [resolvable:$false] %s566_s17 }
  0x1a   : > { %s568_s24 = scalar_lea.vmem %s567_s17, 512  ;;  %p569_p1 = scmp.lt.s32.totalorder %s753_s10, %s567_s17 }
  0x1b   : > { %311 = vperm.xlu0 %559, %v307_v3   ;;  %v261_v6 = vsel %vm259_vm1, %v247_v5, 0  ;;  %p564_p13 = pnand %p563_p12, %p716_p4  ;;  %p570_p2 = scmp.lt.s32.totalorder %s568_s24, %s562_s16 }
  0x1c   : > { %488 = vmatpush3.bf16.msra.mxu0 %v261_v6 }
  0x1d   : > { %p565_p0 = pneg %p564_p13  ;;  %p571_p3 = por %p570_p2, %p569_p1 }
  0x1f   : > { %490 = vmatmul.mubr.msk.bf16.vlgmr.msra.gmra.mxu0 %vm255_vm2, %v248_v7  ;;  %p572_p5 = pnand %p571_p3, %p565_p0 }
  0x92   : > { %v253_v9 = vpop.permute.xlu0 %252 }
  0x94   : > { %v317_v23 = vpop.permute.xlu1 %316 }
  0x96   : > { %v312_v19 = vpop.permute.xlu0 %311 }
  0xdf   : > { %v297_v10 = vpop.f32.mrf.mxu0 }
  0xe0   : > { %v298_v11 = vadd.f32 %v297_v10, %v253_v9 }
  0xe1   : > { %v491_v12 = vpop.f32.mrf.mxu0 }
  0xe2   : > { %v303_v13 = vmax.f32 %v298_v11, 0.0 }
  0xe3   : > { %v300_v14 = vpop.f32.mrf.mxu0 }
  0xe4   : > { %v304_v15 = vpack.c.bf16 %v303_v13, %v303_v13 }
  0xe5   : > { %v492_v16 = vpop.f32.mrf.mxu0 }
  0xe6   : > { %v330_v17 = vsel %vm328_vm3, %v304_v15, 0 }
  0xe7   : > { %494 = vmatpush3.bf16.msra.mxu1 %v330_v17 }
  0xea   : > { %496 = vmatmul.mubr.msk.bf16.vlgmr.msra.gmra.mxu1 %vm324_vm4, %v561_v18 }
 0x1aa   : > { %v366_v20 = vpop.f32.mrf.mxu1 }
 0x1ab   : > { %v367_v21 = vadd.f32 %v366_v20, %v312_v19 }
 0x1ac   : > { %v497_v22 = vpop.f32.mrf.mxu1 }
 0x1ad   : > { %v373_v24 = vmax.f32 %v367_v21, 0.0 }
 0x1ae   : > { %v369_v25 = vpop.f32.mrf.mxu1 }
 0x1af   : > { %375 = vst [vmem:[%s237_s9] sm:$0xff] %v373_v24  ;;  %v370_v26 = vadd.f32 %v369_v25, %v317_v23 }
 0x1b0   : > { %v498_v27 = vpop.f32.mrf.mxu1 }
 0x1b1   : > { %v374_v28 = vmax.f32 %v370_v26, 0.0 }
 0x1b3   : > { %376 = vst [vmem:[%s237_s9 + $0x8] sm:$0xff] %v374_v28 }
 0x1b4   : > { %575 = shalt.err (!%p572_p5)
}
 0x1b5   : > { %s576_s25 = scalar_lea.hbm %s758_s14, 256  ;;  %s580_s7 = scalar_lea.hbm %s810_s5, 512 }
 0x1b6   : > { %p577_p6 = scmp.ne.s32.totalorder %s758_s14, %s576_s25  ;;  %p581_p10 = scmp.lt.s32.totalorder %s758_s14, %s810_s5 }
 0x1b7   : > { %p582_p11 = scmp.lt.s32.totalorder %s580_s7, %s576_s25 }
 0x1b8   : > { %p578_p7 = pnand %p577_p6, %p716_p4 }
 0x1b9   : > { %p583_p12 = por %p582_p11, %p581_p10 }
 0x1ba   : > { %p579_p9 = pneg %p578_p7 }
 0x1bc   : > { %p584_p13 = pnand %p583_p12, %p579_p9 }
 0x1be   : > { %587 = shalt.err (!%p584_p13)
}
 0x1bf   : > { %s644_s11 = smov 128   ;;  %s645_s12 = smov 8  }
 0x1c0   : > { %499 = dma.vmem_to_hbm [thread:$0]  (%p716_p4), %s753_s10, 256, %s758_s14, %s760_s15, %s644_s11, %s644_s11, %s645_s12  }
 0x1c1 PF: > { %p505_p0 = scmp.ge.s32.totalorder %s638_s23, 2  ;;  %s407_s13 = sand.u32 1, %s618_s18  }
 0x1c2   : > { %s408_s16 = scalar_lea.sflag [#allocation3], %s407_s13 }
 0x1c3   : > { %p502_p1 = pnand %p505_p0, %p723_p8 }
 0x1c5   : > { %p503_p2 = pneg %p502_p1 }
 0x1c7   : > { %613 = dma.done.wait (%p503_p2), %s408_s16, 256  }
 0x1c8   : > { %615 = vsyncadd (%p503_p2), %s408_s16, 4294967040  ;;  %s18_s23 = sadd.s32 1, %s638_s23   ;;  %s813_s18 = smov %s622_s19 }
 0x1c9   : > { %p15_p3 = scmp.ge.s32.totalorder %s18_s23, 4   ;;  %s814_s19 = smov %s626_s20 }
 0x1ca   : > { %s815_s20 = smov %s729_s6  ;;  %s816_s21 = smov %s634_s22 }
 0x1cb   : > { %s817_s22 = smov %s819_s26  ;;  %17 = sbr.rel (!%p15_p3) target bundleno = 4 (0x4), region = 75 }
 0x1d0   :  { %413 = vsyncpa [#allocation3], 1 }
 0x1d1   :  { %415 = vsyncpa [#allocation3 + $0x1], 1 }

// kernel: shared_mlp_forward.1
= control target key start
LH: loop header
LB: loop body
LE: loop exit
PB: predicated region body
PF: predicated region fallthrough
CT: control target
= control target key end

     0   :  { %10 = vsyncpa [#allocation3], 0  ;;  %s805_s0 = inlined_call_operand.vmem [shape: f32[2,4,128], index: 0, kind: input, shape index: {}]   ;;  %s806_s1 = inlined_call_operand.vmem [shape: bf16[8,4], index: 1, kind: input, shape index: {}]   ;;  %s807_s2 = inlined_call_operand.vmem [shape: f32[8,1], index: 2, kind: input, shape index: {}]   ;;  %s808_s3 = inlined_call_operand.vmem [shape: bf16[16,8], index: 3, kind: input, shape index: {}]   ;;  %s809_s4 = inlined_call_operand.vmem [shape: f32[16,1], index: 4, kind: input, shape index: {}]   ;;  %s810_s5 = inlined_call_operand.hbm [shape: f32[2,16,128], index: 5, kind: output, shape index: {}]  }
   0x1   :  { %12 = vsyncpa [#allocation3 + $0x1], 0  ;;  %s676_s18 = smov 0   ;;  %s678_s19 = smov 0  }
   0x2   :  { %s680_s20 = smov 0   ;;  %s682_s21 = smov 0  }
   0x3   :  { %s684_s22 = smov 0   ;;  %s686_s23 = smov 0  }
   0x4 LB: > { %s467_s24 = sadd.s32 4294967295, %s638_s23   ;;  %s468_s25 = sadd.s32 4294967294, %s638_s23   ;;  %s638_s23 = sphi %s686_s23, %s18_s23   ;;  %s634_s22 = sphi %s684_s22, %s817_s22   ;;  %s630_s21 = sphi %s682_s21, %s816_s21   ;;  %s626_s20 = sphi %s680_s20, %s815_s20   ;;  %s622_s19 = sphi %s678_s19, %s814_s19   ;;  %s618_s18 = sphi %s676_s18, %s813_s18  }
   0x5   : > { %s30_s26 = sadd.s32 1, %s634_s22  ;;  %s151_s27 = sadd.s32 1, %s626_s20 }
   0x6   : > { %p32_p0 = scmp.ge.s32.totalorder %s30_s26, 2  ;;  %p161_p1 = scmp.ne.s32.totalorder %s626_s20, %s622_s19 }
   0x7   : > { %p162_p2 = scmp.eq.s32.totalorder %s467_s24, 1  ;;  %p167_p3 = scmp.ne.s32.totalorder %s622_s19, %s618_s18 }
   0x8   : > { %s819_s26 = smov (%p32_p0, %s30_s26), 0  ;;  %p168_p5 = scmp.eq.s32.totalorder %s468_s25, 1 }
   0x9   : > { %p716_p4 = por %p162_p2, %p161_p1  ;;  %s146_s29 = ssub.s32 %s634_s22, %s819_s26 }
   0xa   : > { %p471_p6 = scmp.ge.s32.totalorder %s638_s23, 1  ;;  %p149_p7 = scmp.eq.s32.totalorder %s146_s29, 0 }
   0xb   : > { %p723_p8 = por %p168_p5, %p167_p3  ;;  %p208_p9 = scmp.lt.s32.totalorder %s638_s23, 3 }
   0xc   : > { %s729_s6 = scalar_select %p149_p7, %s626_s20, %s151_s27  }
   0xd   : > { %p209_p10 = pnand %p471_p6, %p208_p9 }
   0xe   : > { %p238_p11 = scmp.lt.s32.totalorder (!%p209_p10), %s630_s21, 1  ;;  %s235_s7 = sand.u32 (!%p209_p10), 1, %s622_s19  }
   0xf   : > { %212 = sbr.rel (%p209_p10) target bundleno = 449 (0x1c1), region = 40  ;;  %s472_s8 = sshll.u32 (!%p209_p10), %s235_s7, 4 }
  0x10   : > { %s482_s11 = sshll.u32 (!%p209_p10), %s630_s21, 8 }
  0x11   : > { %s758_s14 = scalar_lea.hbm (!%p209_p10), %s810_s5, %s482_s11 }
  0x14   : > { %v640_v0 = vmov 0.0   ;;  %vm641_vm0 = vmmov 0   ;;  %v249_v1 = vld [vmem:[%s807_s2] sm:$0xff]  ;;  %s239_s9 = scalar_select %p238_p11, %s630_s21, 1  ;;  %v642_v2 = vmov 0   ;;  %vm259_vm1 = vcmask 1041408  }
  0x15   : > { %487 = vmatprep.subr.bf16.mxu0 %v640_v0  ;;  %489 = vmatprep.mubr.msk.bf16.mxu0 %vm641_vm0, %v640_v0  ;;  %v307_v3 = vld [vmem:[%s809_s4] sm:$0xff]  ;;  %vm255_vm2 = vcmask 31744   ;;  %v308_v8 = vld [vmem:[%s809_s4 + $0x8] sm:$0xff]  ;;  %vm328_vm3 = vcmask 1043456   ;;  %vm324_vm4 = vcmask 64512   ;;  %s643_s21 = smov [#allocation2]  }
  0x16   : > { %559 = vset.pattern.permute.xlu0 %v642_v2  ;;  %493 = vmatprep.subr.bf16.mxu1 %v640_v0  ;;  %s473_s10 = sshll.u32 %s239_s9, 2  ;;  %v248_v7 = vld [vmem:[%s806_s1] sm:$0xf]  ;;  %s237_s9 = scalar_lea.vmem [#allocation2], %s472_s8 }
  0x17   : > { %252 = vperm.xlu0 %559, %v249_v1   ;;  %495 = vmatprep.mubr.msk.bf16.mxu1 %vm641_vm0, %v640_v0  ;;  %s244_s15 = scalar_lea.vmem %s805_s0, %s473_s10  ;;  %v561_v18 = vld [vmem:[%s808_s3] sm:$0xff]   ;;  %s392_s10 = sshll.u32 %s237_s9, 4  ;;  %s753_s10 = int_to_ptr.vmem [resolvable:$true] %s392_s10 }
  0x18   : > { %560 = vset.pattern.permute.xlu1 %v642_v2  ;;  %v246_v4 = vld [vmem:[%s244_s15] sm:$0xf]  ;;  %s760_s15 = scalar_lea.sflag [#allocation3], %s235_s7  ;;  %s562_s16 = scalar_lea.vmem %s753_s10, 256 }
  0x19   : > { %v247_v5 = vpack.c.bf16 %v246_v4, %v246_v4  ;;  %316 = vperm.xlu1 %560, %v308_v8   ;;  %p563_p12 = scmp.ne.s32.totalorder %s753_s10, %s562_s16  ;;  %s566_s17 = sshll.u32 %s643_s21, 4  ;;  %s567_s17 = int_to_ptr.vmem [resolvable:$false] %s566_s17 }
  0x1a   : > { %s568_s24 = scalar_lea.vmem %s567_s17, 512  ;;  %p569_p1 = scmp.lt.s32.totalorder %s753_s10, %s567_s17 }
  0x1b   : > { %311 = vperm.xlu0 %559, %v307_v3   ;;  %v261_v6 = vsel %vm259_vm1, %v247_v5, 0  ;;  %p564_p13 = pnand %p563_p12, %p716_p4  ;;  %p570_p2 = scmp.lt.s32.totalorder %s568_s24, %s562_s16 }
  0x1c   : > { %488 = vmatpush3.bf16.msra.mxu0 %v261_v6 }
  0x1d   : > { %p565_p0 = pneg %p564_p13  ;;  %p571_p3 = por %p570_p2, %p569_p1 }
  0x1f   : > { %490 = vmatmul.mubr.msk.bf16.vlgmr.msra.gmra.mxu0 %vm255_vm2, %v248_v7  ;;  %p572_p5 = pnand %p571_p3, %p565_p0 }
  0x92   : > { %v253_v9 = vpop.permute.xlu0 %252 }
  0x94   : > { %v317_v23 = vpop.permute.xlu1 %316 }
  0x96   : > { %v312_v19 = vpop.permute.xlu0 %311 }
  0xdf   : > { %v297_v10 = vpop.f32.mrf.mxu0 }
  0xe0   : > { %v298_v11 = vadd.f32 %v297_v10, %v253_v9 }
  0xe1   : > { %v491_v12 = vpop.f32.mrf.mxu0 }
  0xe2   : > { %v303_v13 = vmax.f32 %v298_v11, 0.0 }
  0xe3   : > { %v300_v14 = vpop.f32.mrf.mxu0 }
  0xe4   : > { %v304_v15 = vpack.c.bf16 %v303_v13, %v303_v13 }
  0xe5   : > { %v492_v16 = vpop.f32.mrf.mxu0 }
  0xe6   : > { %v330_v17 = vsel %vm328_vm3, %v304_v15, 0 }
  0xe7   : > { %494 = vmatpush3.bf16.msra.mxu1 %v330_v17 }
  0xea   : > { %496 = vmatmul.mubr.msk.bf16.vlgmr.msra.gmra.mxu1 %vm324_vm4, %v561_v18 }
 0x1aa   : > { %v366_v20 = vpop.f32.mrf.mxu1 }
 0x1ab   : > { %v367_v21 = vadd.f32 %v366_v20, %v312_v19 }
 0x1ac   : > { %v497_v22 = vpop.f32.mrf.mxu1 }
 0x1ad   : > { %v373_v24 = vmax.f32 %v367_v21, 0.0 }
 0x1ae   : > { %v369_v25 = vpop.f32.mrf.mxu1 }
 0x1af   : > { %375 = vst [vmem:[%s237_s9] sm:$0xff] %v373_v24  ;;  %v370_v26 = vadd.f32 %v369_v25, %v317_v23 }
 0x1b0   : > { %v498_v27 = vpop.f32.mrf.mxu1 }
 0x1b1   : > { %v374_v28 = vmax.f32 %v370_v26, 0.0 }
 0x1b3   : > { %376 = vst [vmem:[%s237_s9 + $0x8] sm:$0xff] %v374_v28 }
 0x1b4   : > { %575 = shalt.err (!%p572_p5)
}
 0x1b5   : > { %s576_s25 = scalar_lea.hbm %s758_s14, 256  ;;  %s580_s7 = scalar_lea.hbm %s810_s5, 512 }
 0x1b6   : > { %p577_p6 = scmp.ne.s32.totalorder %s758_s14, %s576_s25  ;;  %p581_p10 = scmp.lt.s32.totalorder %s758_s14, %s810_s5 }
 0x1b7   : > { %p582_p11 = scmp.lt.s32.totalorder %s580_s7, %s576_s25 }
 0x1b8   : > { %p578_p7 = pnand %p577_p6, %p716_p4 }
 0x1b9   : > { %p583_p12 = por %p582_p11, %p581_p10 }
 0x1ba   : > { %p579_p9 = pneg %p578_p7 }
 0x1bc   : > { %p584_p13 = pnand %p583_p12, %p579_p9 }
 0x1be   : > { %587 = shalt.err (!%p584_p13)
}
 0x1bf   : > { %s644_s11 = smov 128   ;;  %s645_s12 = smov 8  }
 0x1c0   : > { %499 = dma.vmem_to_hbm [thread:$0]  (%p716_p4), %s753_s10, 256, %s758_s14, %s760_s15, %s644_s11, %s644_s11, %s645_s12  }
 0x1c1 PF: > { %p505_p0 = scmp.ge.s32.totalorder %s638_s23, 2  ;;  %s407_s13 = sand.u32 1, %s618_s18  }
 0x1c2   : > { %s408_s16 = scalar_lea.sflag [#allocation3], %s407_s13 }
 0x1c3   : > { %p502_p1 = pnand %p505_p0, %p723_p8 }
 0x1c5   : > { %p503_p2 = pneg %p502_p1 }
 0x1c7   : > { %613 = dma.done.wait (%p503_p2), %s408_s16, 256  }
 0x1c8   : > { %615 = vsyncadd (%p503_p2), %s408_s16, 4294967040  ;;  %s18_s23 = sadd.s32 1, %s638_s23   ;;  %s813_s18 = smov %s622_s19 }
 0x1c9   : > { %p15_p3 = scmp.ge.s32.totalorder %s18_s23, 4   ;;  %s814_s19 = smov %s626_s20 }
 0x1ca   : > { %s815_s20 = smov %s729_s6  ;;  %s816_s21 = smov %s634_s22 }
 0x1cb   : > { %s817_s22 = smov %s819_s26  ;;  %17 = sbr.rel (!%p15_p3) target bundleno = 4 (0x4), region = 75 }
 0x1d0   :  { %413 = vsyncpa [#allocation3], 1 }
 0x1d1   :  { %415 = vsyncpa [#allocation3 + $0x1], 1 }

</bundles_post_ra>
